<compile_context>
chip_gen: v5e
topology: v5e:2x2
jax: 0.10.0
libtpu: 0.0.40
codegen_flags: <defaults>
</compile_context>

<pallas_src>
import math

import jax
import jax.numpy as jnp
from jax.experimental import pallas as pl
from jax.experimental.pallas import tpu as pltpu

EPS = 1e-5


def _round_up(n, m):
    return ((n + m - 1) // m) * m


def _make_layernorm_kernel(emb_dim, eps):
    inv_n = 1.0 / float(emb_dim)

    def kernel(x_ref, scale_ref, shift_ref, o_ref):
        # Two-pass (centered) statistics in f32; tile is VMEM-resident so the
        # extra pass is cheap and fully hidden under DMA.
        x = x_ref[...].astype(jnp.float32)
        mean = jnp.sum(x, axis=-1, keepdims=True) * inv_n
        diff = x - mean
        var = jnp.sum(diff * diff, axis=-1, keepdims=True) * inv_n  # unbiased=False
        inv_std = jax.lax.rsqrt(var + eps)
        scale = scale_ref[...].astype(jnp.float32)
        shift = shift_ref[...].astype(jnp.float32)
        o_ref[...] = (scale * (diff * inv_std) + shift).astype(o_ref.dtype)

    return kernel


def layernorm(x, scale, shift, *, eps=EPS):
    """LayerNorm over the last axis. x: [..., emb_dim]; scale/shift: [emb_dim]."""
    orig_shape = x.shape
    emb_dim = orig_shape[-1]
    rows = int(math.prod(orig_shape[:-1])) if len(orig_shape) > 1 else 1

    x2d = x.reshape(rows, emb_dim)
    scale2d = scale.reshape(1, emb_dim)
    shift2d = shift.reshape(1, emb_dim)

    itemsize = jnp.dtype(x.dtype).itemsize
    # Sublane multiple: 8 for 32-bit, 16 for 16-bit, 32 for 8-bit packed layouts.
    sublane = {4: 8, 2: 16, 1: 32}.get(itemsize, 8)

    # Lanes actually occupied in VMEM (layout pads the last dim to 128).
    lanes_padded = 128 * pl.cdiv(emb_dim, 128)
    row_bytes_io = lanes_padded * itemsize

    # Per-chip block-size target: ~4 MiB fits comfortably under v7x's 64 MiB
    # per-TC VMEM; with >=128 MiB (v5e/v6e) use ~8 MiB blocks.
    try:
        vmem_cap = int(pltpu.get_tpu_info().vmem_capacity_bytes)
    except Exception:
        vmem_cap = 64 * 1024 * 1024  # conservative (v7x per-TC)
    target_block_bytes = (
        8 * 1024 * 1024 if vmem_cap >= 128 * 1024 * 1024 else 4 * 1024 * 1024
    )

    tile_r = max(sublane, (target_block_bytes // row_bytes_io) // sublane * sublane)
    # Keep >=2 grid steps whenever rows allow (v7x has 2 TensorCores; the
    # "parallel" axis only helps if there is something to shard). No effect on
    # large inputs where tile_r << rows, harmless on 1-TC chips.
    half_rows = _round_up(pl.cdiv(rows, 2), sublane)
    tile_r = min(tile_r, max(sublane, half_rows))

    grid = (pl.cdiv(rows, tile_r),)

    # VMEM budget: double-buffered in + out blocks, ~3 block-sized f32
    # temporaries, plus headroom for scale/shift and compiler scratch.
    block_io_bytes = tile_r * row_bytes_io
    block_f32_bytes = tile_r * lanes_padded * 4
    vmem_limit = 4 * block_io_bytes + 3 * block_f32_bytes + (4 << 20)
    vmem_limit = min(vmem_limit, vmem_cap - (16 << 20))
    vmem_limit = max(vmem_limit, 32 << 20)

    out2d = pl.pallas_call(
        _make_layernorm_kernel(emb_dim, eps),
        out_shape=jax.ShapeDtypeStruct((rows, emb_dim), x.dtype),
        grid_spec=pltpu.PrefetchScalarGridSpec(
            num_scalar_prefetch=0,
            grid=grid,
            in_specs=[
                # Full emb_dim as the last block dim (== full array dim): no
                # wrapper-side padding/slicing, no extra HBM copies.
                pl.BlockSpec((tile_r, emb_dim), lambda i: (i, 0)),
                pl.BlockSpec((1, emb_dim), lambda i: (0, 0)),  # scale: resident
                pl.BlockSpec((1, emb_dim), lambda i: (0, 0)),  # shift: resident
            ],
            out_specs=pl.BlockSpec((tile_r, emb_dim), lambda i: (i, 0)),
        ),
        compiler_params=pltpu.CompilerParams(
            dimension_semantics=("parallel",),  # rows are independent
            vmem_limit_bytes=int(vmem_limit),
        ),
    )(x2d, scale2d, shift2d)

    return out2d.reshape(orig_shape)


def _reference(x, scale, shift, eps=EPS):
    mean = jnp.mean(x, axis=-1, keepdims=True)
    var = jnp.mean((x - mean) ** 2, axis=-1, keepdims=True)
    return scale * ((x - mean) / jnp.sqrt(var + eps)) + shift


if __name__ == "__main__":
    key = jax.random.PRNGKey(0)
    k1, k2 = jax.random.split(key)

    # Case 1: x = torch.rand(2, 3, 768) analogue (emb_dim multiple of 128).
    batch, seq, emb_dim = 2, 3, 768
    x = jax.random.normal(k1, (batch, seq, emb_dim), dtype=jnp.float32)
    scale = jnp.ones((emb_dim,), dtype=jnp.float32)    # nn.Parameter(torch.ones)
    shift = jnp.zeros((emb_dim,), dtype=jnp.float32)   # nn.Parameter(torch.zeros)

    out = jax.block_until_ready(layernorm(x, scale, shift))
    ref = _reference(x, scale, shift)
    assert jnp.allclose(out, ref, atol=1e-4, rtol=1e-4), "mismatch vs reference (768)"

    # Case 2: batch_example = torch.randn(2, 5) analogue (exercises the
    # ragged, non-multiple-of-128 emb_dim path without any wrapper padding).
    x5 = jax.random.normal(k2, (2, 5), dtype=jnp.float32)
    scale5 = jnp.ones((5,), dtype=jnp.float32)
    shift5 = jnp.zeros((5,), dtype=jnp.float32)
    out5 = jax.block_until_ready(layernorm(x5, scale5, shift5))
    ref5 = _reference(x5, scale5, shift5)
    assert jnp.allclose(out5, ref5, atol=1e-4, rtol=1e-4), "mismatch vs reference (5)"

    print("KERNEL_OK")
</pallas_src>

<mosaic_0001>
module attributes {stable_mosaic.version = 11 : i64} {
  func.func @kernel(%arg0: i32, %arg1: memref<8x768xf32, #tpu.memory_space<vmem>>, %arg2: memref<1x768xf32, #tpu.memory_space<vmem>>, %arg3: memref<1x768xf32, #tpu.memory_space<vmem>>, %arg4: memref<8x768xf32, #tpu.memory_space<vmem>>) attributes {dimension_semantics = [#tpu.dimension_semantics<parallel>], iteration_bounds = array<i64: 1>, scalar_prefetch = 0 : i64, scratch_operands = 0 : i64, tpu.core_type = #tpu.core_type<tc>, window_params = [{transform_indices = @transform_0, window_bounds = array<i64: 8, 768>}, {pipeline_mode = #tpu.pipeline_mode<synchronous>, transform_indices = @transform_1, window_bounds = array<i64: 1, 768>}, {pipeline_mode = #tpu.pipeline_mode<synchronous>, transform_indices = @transform_2, window_bounds = array<i64: 1, 768>}, {transform_indices = @transform_3, window_bounds = array<i64: 8, 768>}]} {
    %c0 = arith.constant 0 : index
    %c0_0 = arith.constant 0 : index
    %0 = vector.load %arg1[%c0, %c0_0] : memref<8x768xf32, #tpu.memory_space<vmem>>, vector<8x768xf32>
    %cst = arith.constant dense<0.000000e+00> : vector<8xf32>
    %1 = vector.multi_reduction <add>, %0, %cst [1] : vector<8x768xf32> to vector<8xf32>
    %2 = vector.shape_cast %1 : vector<8xf32> to vector<8x1xf32>
    %cst_1 = arith.constant 0.00130208337 : f32
    %3 = vector.broadcast %cst_1 : f32 to vector<8x1xf32>
    %4 = arith.mulf %2, %3 : vector<8x1xf32>
    %5 = vector.broadcast %4 : vector<8x1xf32> to vector<8x768xf32>
    %6 = arith.subf %0, %5 : vector<8x768xf32>
    %7 = arith.mulf %6, %6 : vector<8x768xf32>
    %cst_2 = arith.constant dense<0.000000e+00> : vector<8xf32>
    %8 = vector.multi_reduction <add>, %7, %cst_2 [1] : vector<8x768xf32> to vector<8xf32>
    %9 = vector.shape_cast %8 : vector<8xf32> to vector<8x1xf32>
    %cst_3 = arith.constant 0.00130208337 : f32
    %10 = vector.broadcast %cst_3 : f32 to vector<8x1xf32>
    %11 = arith.mulf %9, %10 : vector<8x1xf32>
    %cst_4 = arith.constant 9.99999974E-6 : f32
    %12 = vector.broadcast %cst_4 : f32 to vector<8x1xf32>
    %13 = arith.addf %11, %12 : vector<8x1xf32>
    %14 = math.rsqrt %13 : vector<8x1xf32>
    %c0_5 = arith.constant 0 : index
    %c0_6 = arith.constant 0 : index
    %15 = vector.load %arg2[%c0_5, %c0_6] : memref<1x768xf32, #tpu.memory_space<vmem>>, vector<1x768xf32>
    %c0_7 = arith.constant 0 : index
    %c0_8 = arith.constant 0 : index
    %16 = vector.load %arg3[%c0_7, %c0_8] : memref<1x768xf32, #tpu.memory_space<vmem>>, vector<1x768xf32>
    %17 = vector.broadcast %14 : vector<8x1xf32> to vector<8x768xf32>
    %18 = arith.mulf %6, %17 : vector<8x768xf32>
    %19 = vector.broadcast %15 : vector<1x768xf32> to vector<8x768xf32>
    %20 = arith.mulf %19, %18 : vector<8x768xf32>
    %21 = vector.broadcast %16 : vector<1x768xf32> to vector<8x768xf32>
    %22 = arith.addf %20, %21 : vector<8x768xf32>
    %c0_9 = arith.constant 0 : index
    %c0_10 = arith.constant 0 : index
    %23 = vector.load %arg4[%c0_9, %c0_10] : memref<8x768xf32, #tpu.memory_space<vmem>>, vector<8x768xf32>
    tpu.vector_store %arg4[%c0_9, %c0_10], %22 {strides = array<i32>} : memref<8x768xf32, #tpu.memory_space<vmem>>, vector<8x768xf32>,
    return
  }
  func.func @transform_0(%arg0: i32) -> (i32, i32) {
    %c0_i32 = arith.constant 0 : i32
    %c0_i32_0 = arith.constant 0 : i32
    return %arg0, %c0_i32 : i32, i32
  }
  func.func @transform_1(%arg0: i32) -> (i32, i32) {
    %c0_i32 = arith.constant 0 : i32
    %c0_i32_0 = arith.constant 0 : i32
    %c0_i32_1 = arith.constant 0 : i32
    return %c0_i32, %c0_i32_0 : i32, i32
  }
  func.func @transform_2(%arg0: i32) -> (i32, i32) {
    %c0_i32 = arith.constant 0 : i32
    %c0_i32_0 = arith.constant 0 : i32
    %c0_i32_1 = arith.constant 0 : i32
    return %c0_i32, %c0_i32_0 : i32, i32
  }
  func.func @transform_3(%arg0: i32) -> (i32, i32) {
    %c0_i32 = arith.constant 0 : i32
    %c0_i32_0 = arith.constant 0 : i32
    return %arg0, %c0_i32 : i32, i32
  }
}

</mosaic_0001>

<bundles_post_ra>
// kernel: tpu_custom_call.1
= control target key start
LH: loop header
LB: loop body
LE: loop exit
PB: predicated region body
PF: predicated region fallthrough
CT: control target
= control target key end

     0   :  { %8 = vsyncpa [#allocation3], 0  ;;  %s315_s0 = inlined_call_operand.hbm [shape: f32[6,768], index: 0, kind: input, shape index: {}]   ;;  %s316_s1 = inlined_call_operand.hbm [shape: f32[1,768], index: 1, kind: input, shape index: {}]   ;;  %s317_s2 = inlined_call_operand.hbm [shape: f32[1,768], index: 2, kind: input, shape index: {}]   ;;  %s318_s3 = inlined_call_operand.hbm [shape: f32[6,768], index: 3, kind: output, shape index: {}]  }
   0x1   :  { %9 = vsyncpa [#allocation6], 0  ;;  %s27_s14 = sshll.u32 %s316_s1, 4  ;;  %s28_s14 = int_to_ptr.hbm [resolvable:$true] %s27_s14 }
   0x2   :  { %10 = vsyncpa [#allocation4], 0  ;;  %s279_s15 = smov [#allocation5]   ;;  %s16_s19 = sshll.u32 %s315_s0, 4  ;;  %s17_s19 = int_to_ptr.hbm [resolvable:$true] %s16_s19 }
   0x3   :  { %s29_s16 = sshll.u32 %s279_s15, 4  ;;  %s280_s20 = smov [#allocation2]   ;;  %s30_s16 = int_to_ptr.vmem [resolvable:$true] %s29_s16 }
   0x4   :  { %32 = dma.hbm_to_vmem [thread:$0]  %s28_s14, 96, %s30_s16, [#allocation6]  }
   0x5   :  { %s18_s21 = sshll.u32 %s280_s20, 4  ;;  %s38_s24 = sshll.u32 %s317_s2, 4  ;;  %s19_s21 = int_to_ptr.vmem [resolvable:$true] %s18_s21  ;;  %s39_s24 = int_to_ptr.hbm [resolvable:$true] %s38_s24 }
   0x6   :  { %21 = dma.hbm_to_vmem [thread:$0]  %s17_s19, 768, %s19_s21, [#allocation3]  }
   0x7   :  { %s281_s1 = smov [#allocation7]  }
   0x8   :  { %s40_s25 = sshll.u32 %s281_s1, 4  ;;  %s41_s25 = int_to_ptr.vmem [resolvable:$true] %s40_s25 }
   0x9   :  { %43 = dma.hbm_to_vmem [thread:$0]  %s39_s24, 96, %s41_s25, [#allocation6]  }
   0xa   :  { %273 = dma.done.wait [#allocation3], 768  }
   0xb   :  { %274 = vsyncadd [#allocation3], 4294966528 }
   0xc   :  { %275 = dma.done.wait [#allocation6], 192  }
   0xd   :  { %276 = vsyncadd [#allocation6], 4294967104  ;;  %v56_v0 = vld [vmem:[#allocation2] sm:$0xff]  ;;  %v57_v1 = vld [vmem:[#allocation2 + $0x8] sm:$0xff]  ;;  %s282_s0 = smov [#allocation8]   ;;  %s160_s28 = sshll.u32 %s318_s3, 4  ;;  %s161_s28 = int_to_ptr.hbm [resolvable:$true] %s160_s28 }
   0xe   :  { %v58_v2 = vld [vmem:[#allocation2 + $0x10] sm:$0xff]  ;;  %v62_v3 = vadd.f32 %v57_v1, %v56_v0  ;;  %v59_v4 = vld [vmem:[#allocation2 + $0x18] sm:$0xff]  ;;  %v60_v6 = vld [vmem:[#allocation2 + $0x20] sm:$0xff]  ;;  %s158_s2 = sshll.u32 %s282_s0, 4  ;;  %s159_s2 = int_to_ptr.vmem [resolvable:$true] %s158_s2 }
   0xf   :  { %v61_v8 = vld [vmem:[#allocation2 + $0x28] sm:$0xff]  ;;  %v101_v37 = vld [vmem:[#allocation5] sm:$0x3f]  ;;  %v102_v39 = vld [vmem:[#allocation7] sm:$0x3f] }
  0x10   :  { %v63_v5 = vadd.f32 %v62_v3, %v58_v2  ;;  %v110_v40 = vperm.slane %v101_v37, 0  ;;  %v111_v41 = vperm.slane %v101_v37, 1  ;;  %v112_v43 = vperm.slane %v101_v37, 2 }
  0x11   :  { %v113_v44 = vperm.slane %v101_v37, 3  ;;  %v114_v45 = vperm.slane %v101_v37, 4  ;;  %v115_v46 = vperm.slane %v101_v37, 5  ;;  %v129_v47 = vperm.slane %v102_v39, 0 }
  0x12   :  { %v64_v7 = vadd.f32 %v63_v5, %v59_v4  ;;  %v130_v48 = vperm.slane %v102_v39, 1  ;;  %v131_v49 = vperm.slane %v102_v39, 2  ;;  %v132_v55 = vperm.slane %v102_v39, 3 }
  0x13   :  { %v133_v56 = vperm.slane %v102_v39, 4  ;;  %v134_v63 = vperm.slane %v102_v39, 5 }
  0x14   :  { %v65_v9 = vadd.f32 %v64_v7, %v60_v6 }
  0x16   :  { %v66_v10 = vadd.f32 %v65_v9, %v61_v8 }
  0x18   :  { %67 = vadd.xlane.f32.xlu0 %v66_v10 }
  0x8b   :  { %v68_v11 = vpop.xlane.xlu0 %67 }
  0x8c   :  { %v69_v12 = vmul.f32 0.0013020834, %v68_v11 }
  0x8e   :  { %v70_v13 = vsub.f32 %v56_v0, %v69_v12  ;;  %v71_v14 = vsub.f32 %v57_v1, %v69_v12  ;;  %v72_v15 = vsub.f32 %v58_v2, %v69_v12  ;;  %v73_v16 = vsub.f32 %v59_v4, %v69_v12 }
  0x8f   :  { %v74_v19 = vsub.f32 %v60_v6, %v69_v12  ;;  %v75_v22 = vsub.f32 %v61_v8, %v69_v12 }
  0x90   :  { %v76_v17 = vmul.f32 %v70_v13, %v70_v13  ;;  %v77_v18 = vmul.f32 %v71_v14, %v71_v14  ;;  %v78_v20 = vmul.f32 %v72_v15, %v72_v15  ;;  %v79_v23 = vmul.f32 %v73_v16, %v73_v16 }
  0x91   :  { %v80_v25 = vmul.f32 %v74_v19, %v74_v19  ;;  %v81_v27 = vmul.f32 %v75_v22, %v75_v22 }
  0x92   :  { %v82_v21 = vadd.f32 %v77_v18, %v76_v17 }
  0x94   :  { %v83_v24 = vadd.f32 %v82_v21, %v78_v20 }
  0x96   :  { %v84_v26 = vadd.f32 %v83_v24, %v79_v23 }
  0x98   :  { %v85_v28 = vadd.f32 %v84_v26, %v80_v25 }
  0x9a   :  { %v86_v29 = vadd.f32 %v85_v28, %v81_v27 }
  0x9c   :  { %87 = vadd.xlane.f32.xlu0 %v86_v29 }
 0x10f   :  { %v88_v30 = vpop.xlane.xlu0 %87 }
 0x110   :  { %v89_v31 = vmul.f32 0.0013020834, %v88_v30 }
 0x112   :  { %v90_v32 = vadd.f32 1e-05, %v89_v31 }
 0x114   :  { %175 = vrsqrt.f32 %v90_v32  ;;  %vm97_vm1 = vweird.f32 %v90_v32 }
 0x11a   :  { %v176_v33 = vpop.eup %175 }
 0x11b   :  { %v92_v34 = vmul.f32 %v176_v33, %v90_v32  ;;  %vm98_vm0 = vweird.f32 %v176_v33 }
 0x11c   :  { %vm99_vm2 = vmor %vm97_vm1, %vm98_vm0 }
 0x11d   :  { %v93_v35 = vmul.f32 %v176_v33, %v92_v34 }
 0x11f   :  { %v94_v36 = vmul.f32 0.5, %v93_v35 }
 0x121   :  { %v95_v38 = vsub.f32 1.5, %v94_v36 }
 0x123   :  { %v96_v42 = vmul.f32 %v176_v33, %v95_v38 }
 0x125   :  { %v100_v50 = vsel %vm99_vm2, %v176_v33, %v96_v42 }
 0x126   :  { %v103_v51 = vmul.f32 %v100_v50, %v70_v13  ;;  %v104_v52 = vmul.f32 %v100_v50, %v71_v14  ;;  %v105_v53 = vmul.f32 %v100_v50, %v72_v15  ;;  %v106_v54 = vmul.f32 %v100_v50, %v73_v16 }
 0x127   :  { %v107_v57 = vmul.f32 %v100_v50, %v74_v19  ;;  %v108_v58 = vmul.f32 %v100_v50, %v75_v22 }
 0x128   :  { %v122_v59 = vmul.f32 %v110_v40, %v103_v51  ;;  %v123_v60 = vmul.f32 %v111_v41, %v104_v52  ;;  %v124_v61 = vmul.f32 %v112_v43, %v105_v53  ;;  %v125_v62 = vmul.f32 %v113_v44, %v106_v54 }
 0x129   :  { %v126_v0 = vmul.f32 %v114_v45, %v107_v57  ;;  %v127_v1 = vmul.f32 %v115_v46, %v108_v58 }
 0x12a   :  { %v141_v2 = vadd.f32 %v129_v47, %v122_v59  ;;  %v142_v3 = vadd.f32 %v130_v48, %v123_v60  ;;  %v143_v4 = vadd.f32 %v131_v49, %v124_v61  ;;  %v144_v5 = vadd.f32 %v132_v55, %v125_v62 }
 0x12b   :  { %v145_v6 = vadd.f32 %v133_v56, %v126_v0  ;;  %v146_v7 = vadd.f32 %v134_v63, %v127_v1 }
 0x12c   :  { %147 = vst [vmem:[#allocation8] sm:$0xff] %v141_v2 }
 0x12d   :  { %148 = vst [vmem:[#allocation8 + $0x8] sm:$0xff] %v142_v3 }
 0x12e   :  { %149 = vst [vmem:[#allocation8 + $0x10] sm:$0xff] %v143_v4 }
 0x12f   :  { %150 = vst [vmem:[#allocation8 + $0x18] sm:$0xff] %v144_v5 }
 0x130   :  { %151 = vst [vmem:[#allocation8 + $0x20] sm:$0xff] %v145_v6 }
 0x131   :  { %152 = vst [vmem:[#allocation8 + $0x28] sm:$0xff] %v146_v7 }
 0x132   :  { %163 = dma.vmem_to_hbm [thread:$0]  %s159_s2, 768, %s161_s28, [#allocation4]  }
 0x133   :  { %277 = dma.done.wait [#allocation4], 768  }
 0x134   :  { %278 = vsyncadd [#allocation4], 4294966528 }
 0x135   :  { %168 = vsyncpa [#allocation3], 1 }
 0x136   :  { %169 = vsyncpa [#allocation6], 1 }
 0x137   :  { %170 = vsyncpa [#allocation4], 1 }

</bundles_post_ra>
